<compile_context>
chip_gen: v7x
topology: tpu7x:2x2x1
jax: 0.10.0
libtpu: 0.0.40
codegen_flags: <defaults>
</compile_context>

<pallas_src>
import math
import numpy as np
import jax
import jax.numpy as jnp
from jax.experimental import pallas as pl
from jax.experimental.pallas import tpu as pltpu

# ---- static hyper-parameters (small, consistent with the module) -------------
BATCH = 2
SEQ = 8
IN_DIM = 32        # in_dim
Z_DIM = 64         # z_dim (hidden of the adapter MLP)
TASK_DIM = 16      # task_embed_dim
ROW_TILE = 8       # sublane-aligned row tile (B*SEQ rows split across the grid)


# ------------------------------ Pallas kernel ---------------------------------
def _mt_adapter_kernel(x_ref, t_ref, w1x_ref, w1t_ref, b1_ref,
                       w2_ref, b2_ref, out_ref):
    x = x_ref[...]                                                    # (rows, in)
    # cat([x, t], -1) @ W1  ==  x @ W1[:in_dim] + t @ W1[in_dim:]  (no concat copy)
    h = (jnp.dot(x, w1x_ref[...], preferred_element_type=jnp.float32)
         + jnp.dot(t_ref[...], w1t_ref[...], preferred_element_type=jnp.float32)
         + b1_ref[...])                                               # (rows, z)
    h = jnp.maximum(h, 0.0)                                           # ReLU
    y = jnp.dot(h, w2_ref[...], preferred_element_type=jnp.float32) + b2_ref[...]
    out_ref[...] = x + y                                              # residual


# ------------------------------ wrapper (glue) ---------------------------------
def mt_adapter_forward(params, x_btd, t_btd):
    """Mirrors MTAdapter.forward: x + net(cat([x, t], -1))."""
    B, T, D = x_btd.shape
    Dt = t_btd.shape[-1]
    N = B * T
    assert N % ROW_TILE == 0, "row count must be a multiple of the sublane tile"
    n_blocks = N // ROW_TILE

    # contiguous (free) flatten of (B, T, *) -> (B*T, *); features stay lane-dense
    x2 = x_btd.reshape(N, D)
    t2 = t_btd.reshape(N, Dt)

    def row_spec(d):
        return pl.BlockSpec((ROW_TILE, d), lambda i: (i, 0))

    def full_spec(a):
        nd = a.ndim
        return pl.BlockSpec(a.shape, lambda i, _n=nd: (0,) * _n)

    out = pl.pallas_call(
        _mt_adapter_kernel,
        out_shape=jax.ShapeDtypeStruct((N, D), jnp.float32),
        grid_spec=pltpu.PrefetchScalarGridSpec(
            num_scalar_prefetch=0,
            grid=(n_blocks,),
            in_specs=[row_spec(D),                     # x rows
                      row_spec(Dt),                    # task rows
                      full_spec(params["w1x"]),        # (in, z)
                      full_spec(params["w1t"]),        # (task, z)
                      full_spec(params["b1"]),         # (1, z)
                      full_spec(params["w2"]),         # (z, in)
                      full_spec(params["b2"])],        # (1, in)
            out_specs=row_spec(D)),
        compiler_params=pltpu.CompilerParams(dimension_semantics=("parallel",)),
    )(x2, t2, params["w1x"], params["w1t"], params["b1"],
      params["w2"], params["b2"])

    return out.reshape(B, T, D)


# ------------------------------ pure-JAX reference -----------------------------
def reference_forward(params, x, t):
    w1 = jnp.concatenate([params["w1x"], params["w1t"]], axis=0)      # (in+task, z)
    z = jnp.concatenate([x, t], axis=-1)
    h = jnp.maximum(z @ w1 + params["b1"], 0.0)
    return x + h @ params["w2"] + params["b2"]


# ------------------------------ deterministic params ---------------------------
def init_params(key):
    ks = jax.random.split(key, 4)
    s1 = 1.0 / math.sqrt(IN_DIM + TASK_DIM)
    s2 = 1.0 / math.sqrt(Z_DIM)
    # NormalInitLinear ~ Linear with normal init; stored pre-transposed (in, out).
    w1 = (s1 * jax.random.normal(ks[0], (IN_DIM + TASK_DIM, Z_DIM))).astype(jnp.float32)
    w2 = (s2 * jax.random.normal(ks[1], (Z_DIM, IN_DIM))).astype(jnp.float32)
    b1 = (0.1 * jax.random.normal(ks[2], (1, Z_DIM))).astype(jnp.float32)
    b2 = (0.1 * jax.random.normal(ks[3], (1, IN_DIM))).astype(jnp.float32)
    return dict(w1x=w1[:IN_DIM], w1t=w1[IN_DIM:], b1=b1, w2=w2, b2=b2)


if __name__ == "__main__":
    key = jax.random.PRNGKey(0)
    kp, kx, kt = jax.random.split(key, 3)
    params = init_params(kp)

    x = jax.random.normal(kx, (BATCH, SEQ, IN_DIM), jnp.float32)
    t = jax.random.normal(kt, (BATCH, SEQ, TASK_DIM), jnp.float32)

    out = mt_adapter_forward(params, x, t)
    jax.block_until_ready(out)

    ref = reference_forward(params, x, t)
    np.testing.assert_allclose(np.asarray(out), np.asarray(ref),
                               rtol=1e-3, atol=1e-3)
    print("KERNEL_OK")
</pallas_src>

<mosaic_0001>
module attributes {stable_mosaic.version = 11 : i64} {
  func.func @_mt_adapter_kernel(%arg0: i32, %arg1: memref<8x32xf32, #tpu.memory_space<vmem>>, %arg2: memref<8x16xf32, #tpu.memory_space<vmem>>, %arg3: memref<32x64xf32, #tpu.memory_space<vmem>>, %arg4: memref<16x64xf32, #tpu.memory_space<vmem>>, %arg5: memref<1x64xf32, #tpu.memory_space<vmem>>, %arg6: memref<64x32xf32, #tpu.memory_space<vmem>>, %arg7: memref<1x32xf32, #tpu.memory_space<vmem>>, %arg8: memref<8x32xf32, #tpu.memory_space<vmem>>) attributes {dimension_semantics = [#tpu.dimension_semantics<parallel>], iteration_bounds = array<i64: 2>, scalar_prefetch = 0 : i64, scratch_operands = 0 : i64, tpu.core_type = #tpu.core_type<tc>, window_params = [{transform_indices = @transform_0, window_bounds = array<i64: 8, 32>}, {transform_indices = @transform_1, window_bounds = array<i64: 8, 16>}, {pipeline_mode = #tpu.pipeline_mode<synchronous>, transform_indices = @transform_2, window_bounds = array<i64: 32, 64>}, {pipeline_mode = #tpu.pipeline_mode<synchronous>, transform_indices = @transform_3, window_bounds = array<i64: 16, 64>}, {pipeline_mode = #tpu.pipeline_mode<synchronous>, transform_indices = @transform_4, window_bounds = array<i64: 1, 64>}, {pipeline_mode = #tpu.pipeline_mode<synchronous>, transform_indices = @transform_5, window_bounds = array<i64: 64, 32>}, {pipeline_mode = #tpu.pipeline_mode<synchronous>, transform_indices = @transform_6, window_bounds = array<i64: 1, 32>}, {transform_indices = @transform_7, window_bounds = array<i64: 8, 32>}]} {
    %c0 = arith.constant 0 : index
    %c0_0 = arith.constant 0 : index
    %0 = vector.load %arg1[%c0, %c0_0] : memref<8x32xf32, #tpu.memory_space<vmem>>, vector<8x32xf32>
    %c0_1 = arith.constant 0 : index
    %c0_2 = arith.constant 0 : index
    %1 = vector.load %arg3[%c0_1, %c0_2] : memref<32x64xf32, #tpu.memory_space<vmem>>, vector<32x64xf32>
    %cst = arith.constant dense<0.000000e+00> : vector<8x64xf32>
    %2 = tpu.matmul %0, %1, %cst {dimension_numbers = #tpu.dot_dimension_numbers<[1], [0], [0], [1], [0, 0, 1, 1], [], []>} : vector<8x32xf32>, vector<32x64xf32>, vector<8x64xf32> -> vector<8x64xf32>
    %c0_3 = arith.constant 0 : index
    %c0_4 = arith.constant 0 : index
    %3 = vector.load %arg2[%c0_3, %c0_4] : memref<8x16xf32, #tpu.memory_space<vmem>>, vector<8x16xf32>
    %c0_5 = arith.constant 0 : index
    %c0_6 = arith.constant 0 : index
    %4 = vector.load %arg4[%c0_5, %c0_6] : memref<16x64xf32, #tpu.memory_space<vmem>>, vector<16x64xf32>
    %cst_7 = arith.constant dense<0.000000e+00> : vector<8x64xf32>
    %5 = tpu.matmul %3, %4, %cst_7 {dimension_numbers = #tpu.dot_dimension_numbers<[1], [0], [0], [1], [0, 0, 1, 1], [], []>} : vector<8x16xf32>, vector<16x64xf32>, vector<8x64xf32> -> vector<8x64xf32>
    %6 = arith.addf %2, %5 : vector<8x64xf32>
    %c0_8 = arith.constant 0 : index
    %c0_9 = arith.constant 0 : index
    %7 = vector.load %arg5[%c0_8, %c0_9] : memref<1x64xf32, #tpu.memory_space<vmem>>, vector<1x64xf32>
    %8 = vector.broadcast %7 : vector<1x64xf32> to vector<8x64xf32>
    %9 = arith.addf %6, %8 : vector<8x64xf32>
    %cst_10 = arith.constant 0.000000e+00 : f32
    %10 = vector.broadcast %cst_10 : f32 to vector<8x64xf32>
    %11 = arith.maximumf %9, %10 : vector<8x64xf32>
    %c0_11 = arith.constant 0 : index
    %c0_12 = arith.constant 0 : index
    %12 = vector.load %arg6[%c0_11, %c0_12] : memref<64x32xf32, #tpu.memory_space<vmem>>, vector<64x32xf32>
    %cst_13 = arith.constant dense<0.000000e+00> : vector<8x32xf32>
    %13 = tpu.matmul %11, %12, %cst_13 {dimension_numbers = #tpu.dot_dimension_numbers<[1], [0], [0], [1], [0, 0, 1, 1], [], []>} : vector<8x64xf32>, vector<64x32xf32>, vector<8x32xf32> -> vector<8x32xf32>
    %c0_14 = arith.constant 0 : index
    %c0_15 = arith.constant 0 : index
    %14 = vector.load %arg7[%c0_14, %c0_15] : memref<1x32xf32, #tpu.memory_space<vmem>>, vector<1x32xf32>
    %15 = vector.broadcast %14 : vector<1x32xf32> to vector<8x32xf32>
    %16 = arith.addf %13, %15 : vector<8x32xf32>
    %17 = arith.addf %0, %16 : vector<8x32xf32>
    %c0_16 = arith.constant 0 : index
    %c0_17 = arith.constant 0 : index
    %18 = vector.load %arg8[%c0_16, %c0_17] : memref<8x32xf32, #tpu.memory_space<vmem>>, vector<8x32xf32>
    tpu.vector_store %arg8[%c0_16, %c0_17], %17 {strides = array<i32>} : memref<8x32xf32, #tpu.memory_space<vmem>>, vector<8x32xf32>,
    return
  }
  func.func @transform_0(%arg0: i32) -> (i32, i32) {
    %c0_i32 = arith.constant 0 : i32
    %c0_i32_0 = arith.constant 0 : i32
    return %arg0, %c0_i32 : i32, i32
  }
  func.func @transform_1(%arg0: i32) -> (i32, i32) {
    %c0_i32 = arith.constant 0 : i32
    %c0_i32_0 = arith.constant 0 : i32
    return %arg0, %c0_i32 : i32, i32
  }
  func.func @transform_2(%arg0: i32) -> (i32, i32) {
    %c0_i32 = arith.constant 0 : i32
    %c0_i32_0 = arith.constant 0 : i32
    %c0_i32_1 = arith.constant 0 : i32
    return %c0_i32, %c0_i32_0 : i32, i32
  }
  func.func @transform_3(%arg0: i32) -> (i32, i32) {
    %c0_i32 = arith.constant 0 : i32
    %c0_i32_0 = arith.constant 0 : i32
    %c0_i32_1 = arith.constant 0 : i32
    return %c0_i32, %c0_i32_0 : i32, i32
  }
  func.func @transform_4(%arg0: i32) -> (i32, i32) {
    %c0_i32 = arith.constant 0 : i32
    %c0_i32_0 = arith.constant 0 : i32
    %c0_i32_1 = arith.constant 0 : i32
    return %c0_i32, %c0_i32_0 : i32, i32
  }
  func.func @transform_5(%arg0: i32) -> (i32, i32) {
    %c0_i32 = arith.constant 0 : i32
    %c0_i32_0 = arith.constant 0 : i32
    %c0_i32_1 = arith.constant 0 : i32
    return %c0_i32, %c0_i32_0 : i32, i32
  }
  func.func @transform_6(%arg0: i32) -> (i32, i32) {
    %c0_i32 = arith.constant 0 : i32
    %c0_i32_0 = arith.constant 0 : i32
    %c0_i32_1 = arith.constant 0 : i32
    return %c0_i32, %c0_i32_0 : i32, i32
  }
  func.func @transform_7(%arg0: i32) -> (i32, i32) {
    %c0_i32 = arith.constant 0 : i32
    %c0_i32_0 = arith.constant 0 : i32
    return %arg0, %c0_i32 : i32, i32
  }
}

</mosaic_0001>

<bundles_post_ra>
// kernel: tpu_custom_call.1
= control target key start
LH: loop header
LB: loop body
LE: loop exit
PB: predicated region body
PF: predicated region fallthrough
CT: control target
= control target key end

     0   :  { %12 = vsyncpa [#allocation3], 0  ;;  %s1029_s0 = inlined_call_operand.vmem [shape: f32[16,32], index: 0, kind: input, shape index: {}]   ;;  %s1030_s1 = inlined_call_operand.vmem [shape: f32[16,16], index: 1, kind: input, shape index: {}]   ;;  %s1031_s2 = inlined_call_operand.vmem [shape: f32[32,64], index: 2, kind: input, shape index: {}]   ;;  %s1032_s3 = inlined_call_operand.vmem [shape: f32[16,64], index: 3, kind: input, shape index: {}]   ;;  %s1033_s4 = inlined_call_operand.vmem [shape: f32[1,64], index: 4, kind: input, shape index: {}]   ;;  %s1034_s5 = inlined_call_operand.vmem [shape: f32[64,32], index: 5, kind: input, shape index: {}]   ;;  %s1035_s6 = inlined_call_operand.vmem [shape: f32[1,32], index: 6, kind: input, shape index: {}]   ;;  %s1036_s7 = inlined_call_operand.hbm [shape: f32[16,32], index: 7, kind: output, shape index: {}]  }
   0x1   :  { %14 = vsyncpa [#allocation3 + $0x1], 0  ;;  %s873_s24 = smov 0   ;;  %s875_s25 = smov 0  }
   0x2   :  { %s877_s26 = smov 0   ;;  %s879_s27 = smov 0  }
   0x3 LB: > { %s894_s28 = sadd.s32 4294967295, %s827_s27   ;;  %s632_s29 = sadd.s32 4294967294, %s827_s27   ;;  %s827_s27 = sphi %s879_s27, %s1042_s27   ;;  %s823_s26 = sphi %s877_s26, %s1041_s26   ;;  %s819_s25 = sphi %s875_s25, %s1040_s25   ;;  %s815_s24 = sphi %s873_s24, %s1039_s24  }
   0x4   : > { %s898_s30 = sadd.s32 1, %s827_s27   ;;  %s184_s8 = sadd.s32 1, %s823_s26 }
   0x5   : > { %s181_s9 = ssub.s32 %s827_s27, %s898_s30  ;;  %p194_p0 = scmp.ne.s32.totalorder %s823_s26, %s819_s25 }
   0x6   : > { %p182_p1 = scmp.eq.s32.totalorder %s181_s9, 0  ;;  %p195_p2 = scmp.eq.s32.totalorder %s894_s28, 1 }
   0x7   : > { %p200_p3 = scmp.ne.s32.totalorder %s819_s25, %s815_s24  ;;  %p201_p4 = scmp.eq.s32.totalorder %s632_s29, 1 }
   0x8   : > { %s909_s10 = scalar_select %p182_p1, %s823_s26, %s184_s8  }
   0x9   : > { %p911_p5 = por %p195_p2, %p194_p0  ;;  %p915_p6 = por %p201_p4, %p200_p3 }
   0xa   : > { %p635_p7 = scmp.ge.s32.totalorder %s827_s27, 1  ;;  %p248_p8 = scmp.lt.s32.totalorder %s827_s27, 3 }
   0xc   : > { %p249_p9 = pnand %p635_p7, %p248_p8 }
   0xd   : > { %v297_v0 = vld [vmem:[%s1032_s3] sm:$0xff] (!%p249_p9)  ;;  %v298_v1 = vld [vmem:[%s1032_s3 + $0x8] sm:$0xff] (!%p249_p9)  ;;  %p283_p10 = scmp.lt.s32.totalorder (!%p249_p9), %s894_s28, 1  ;;  %v829_v2 = vmov (!%p249_p9), 0.0|0.0   ;;  %vm830_vm0 = vmmov (!%p249_p9), 0   ;;  %v831_v4 = vmov (!%p249_p9), 0.0  }
   0xe   : > { %252 = sbr.rel (%p249_p9) target bundleno = 482 (0x1e2), region = 48  ;;  %702 = vmatprep.subr.bf16.mxu1 (!%p249_p9), %v829_v2  ;;  %v703_v3 = vpack.c.bf16 (!%p249_p9), %v298_v1, %v297_v0  ;;  %669 = vmatprep.mubr.msk.f32.mxu1 (!%p249_p9), %vm830_vm0, %v831_v4  ;;  %v292_v5 = vld [vmem:[%s1031_s2] sm:$0xff] (!%p249_p9)  ;;  %v293_v6 = vld [vmem:[%s1031_s2 + $0x8] sm:$0xff] (!%p249_p9)  ;;  %vm299_vm1 = vcmask (!%p249_p9), 130048   ;;  %v294_v11 = vld [vmem:[%s1031_s2 + $0x10] sm:$0xff] (!%p249_p9)  ;;  %vm373_vm2 = vcmask (!%p249_p9), 261120  }
   0xf   : > { %711 = vmatprep.subr.bf16.mxu0 (!%p249_p9), %v829_v2  ;;  %v456_v7 = vld [vmem:[%s1034_s5] sm:$0xff] (!%p249_p9)  ;;  %v457_v8 = vld [vmem:[%s1034_s5 + $0x8] sm:$0xff] (!%p249_p9)  ;;  %699 = vmatprep.mubr.msk.f32.mxu0 (!%p249_p9), %vm830_vm0, %v831_v4  ;;  %v706_v10 = vpack.c.bf16 (!%p249_p9), %v293_v6, %v292_v5  ;;  %v295_v12 = vld [vmem:[%s1031_s2 + $0x18] sm:$0xff] (!%p249_p9)  ;;  %vm471_vm3 = vcmask (!%p249_p9), 523264   ;;  %s280_s23 = sand.u32 (!%p249_p9), 1, %s819_s25   ;;  %s645_s14 = sshll.u32 (!%p249_p9), %s894_s28, 7 }
  0x10   : > { %704 = vmatpush3.bf16.msra.mxu1 (!%p249_p9), %v703_v3  ;;  %v712_v9 = vpack.c.bf16 (!%p249_p9), %v457_v8, %v456_v7  ;;  %v709_v14 = vpack.c.bf16 (!%p249_p9), %v295_v12, %v294_v11  ;;  %v458_v16 = vld [vmem:[%s1034_s5 + $0x10] sm:$0xff] (!%p249_p9)  ;;  %v459_v17 = vld [vmem:[%s1034_s5 + $0x18] sm:$0xff] (!%p249_p9)  ;;  %v460_v19 = vld [vmem:[%s1034_s5 + $0x20] sm:$0xff] (!%p249_p9)  ;;  %s636_s29 = sshll.u32 (!%p249_p9), %s280_s23, 3  ;;  %s986_s18 = scalar_lea.hbm (!%p249_p9), %s1036_s7, %s645_s14 }
  0x11   : > { %705 = vmatprep.subr.bf16.mxu1 (!%p249_p9), %v829_v2  ;;  %v715_v18 = vpack.c.bf16 (!%p249_p9), %v459_v17, %v458_v16  ;;  %v461_v20 = vld [vmem:[%s1034_s5 + $0x28] sm:$0xff] (!%p249_p9)  ;;  %v462_v22 = vld [vmem:[%s1034_s5 + $0x30] sm:$0xff] (!%p249_p9)  ;;  %v463_v23 = vld [vmem:[%s1034_s5 + $0x38] sm:$0xff] (!%p249_p9)  ;;  %s548_s19 = scalar_lea.sflag (!%p249_p9), [#allocation3], %s280_s23 }
  0x12   : > { %713 = vmatpush3.bf16.msra.mxu0 (!%p249_p9), %v712_v9  ;;  %v718_v21 = vpack.c.bf16 (!%p249_p9), %v461_v20, %v460_v19  ;;  %v721_v24 = vpack.c.bf16 (!%p249_p9), %v463_v23, %v462_v22  ;;  %v641_v28 = vld [vmem:[%s1033_s4] ss:$0 sm:$0xff] (!%p249_p9) }
  0x13   : > { %714 = vmatprep.subr.bf16.mxu0 (!%p249_p9), %v829_v2  ;;  %v642_v33 = vld [vmem:[%s1035_s6] ss:$0 sm:$0xff] (!%p249_p9) }
  0x15   : > { %s284_s21 = scalar_select %p283_p10, %s894_s28, 1 }
  0x16   : > { %716 = vmatpush3.bf16.msra.mxu0 %v715_v18  ;;  %s832_s28 = smov [#allocation2]  }
  0x17   : > { %s637_s9 = sshll.u32 %s284_s21, 3  ;;  %717 = vmatprep.subr.bf16.mxu0 %v829_v2  ;;  %s769_s21 = sshll.u32 %s832_s28, 4  ;;  %s770_s21 = int_to_ptr.vmem [resolvable:$false] %s769_s21 }
  0x18   : > { %s290_s15 = scalar_lea.vmem %s1030_s1, %s637_s9  ;;  %s286_s22 = scalar_lea.vmem %s1029_s0, %s637_s9 }
  0x19   : > { %v296_v13 = vld [vmem:[%s290_s15] sm:$0xff]  ;;  %s282_s15 = scalar_lea.vmem [#allocation2], %s636_s29 }
  0x1a   : > { %670 = vmatmul.mubr.msk.f32.vlgmr.msra.gmra.mrb[0].mxu1 %vm299_vm1, %v296_v13  ;;  %v291_v15 = vld [vmem:[%s286_s22] sm:$0xff]  ;;  %719 = vmatpush3.bf16.msra.mxu0 %v718_v21  ;;  %s561_s9 = sshll.u32 %s282_s15, 4  ;;  %s771_s22 = scalar_lea.vmem %s770_s21, 256  ;;  %s988_s9 = int_to_ptr.vmem [resolvable:$true] %s561_s9 }
  0x1b   : > { %707 = vmatpush3.bf16.msra.mxu1 %v706_v10  ;;  %680 = vmatprep.mubr.msk.f32.mxu1 %vm830_vm0, %v831_v4  ;;  %s765_s20 = scalar_lea.vmem %s988_s9, 128  ;;  %p772_p0 = scmp.lt.s32.totalorder %s988_s9, %s770_s21 }
  0x1c   : > { %708 = vmatprep.subr.bf16.mxu1 %v829_v2  ;;  %720 = vmatprep.subr.bf16.mxu0 %v829_v2  ;;  %p766_p11 = scmp.ne.s32.totalorder %s988_s9, %s765_s20  ;;  %p773_p1 = scmp.lt.s32.totalorder %s771_s22, %s765_s20 }
  0x1e   : > { %722 = vmatpush3.bf16.msra.mxu0 %v721_v24  ;;  %p767_p12 = pnand %p766_p11, %p911_p5  ;;  %p774_p2 = por %p773_p1, %p772_p0 }
  0x1f   : > { %710 = vmatpush3.bf16.msra.mxu1 %v709_v14 }
  0x20   : > { %p768_p13 = pneg %p767_p12 }
  0x22   : > { %681 = vmatmul.mubr.msk.f32.vlgmr.msra.gmra.mrb[2].mxu1 %vm373_vm2, %v291_v15  ;;  %p775_p3 = pnand %p774_p2, %p768_p13 }
  0xed   : > { %v369_v25 = vpop.f32.mrb[0].mxu1 }
  0xee   : > { %v671_v26 = vpop.f32.mrb[1].mxu1 }
  0xf5   : > { %v443_v27 = vpop.f32.mrb[2].mxu1 }
  0xf6   : > { %v444_v29 = vadd.f32 %v443_v27, %v369_v25  ;;  %v682_v30 = vpop.f32.mrb[3].mxu1 }
  0xf8   : > { %v454_v31 = vadd.f32 %v641_v28, %v444_v29 }
  0xfa   : > { %v455_v32 = vmax.f32 %v454_v31, 0.0 }
  0xfc   : > { %700 = vmatmul.mubr.msk.f32.vlgmr.msra.gmra.mrb[0].mxu0 %vm471_vm3, %v455_v32 }
 0x1cf   : > { %v541_v34 = vpop.f32.mrb[0].mxu0 }
 0x1d0   : > { %v542_v35 = vadd.f32 %v642_v33, %v541_v34  ;;  %v701_v36 = vpop.f32.mrb[1].mxu0 }
 0x1d2   : > { %v545_v37 = vadd.f32 %v542_v35, %v291_v15 }
 0x1d4   : > { %546 = vst.msk [vmem:[%s282_s15] sm:$0xff] %vm373_vm2, %v545_v37 }
 0x1d5   : > { %778 = shalt.err (!%p775_p3)
}
 0x1d6   : > { %s779_s23 = scalar_lea.hbm %s986_s18, 128  ;;  %s783_s13 = scalar_lea.hbm %s1036_s7, 256 }
 0x1d7   : > { %p780_p4 = scmp.ne.s32.totalorder %s986_s18, %s779_s23  ;;  %p784_p9 = scmp.lt.u32.totalorder %s986_s18, %s1036_s7 }
 0x1d8   : > { %p785_p10 = scmp.lt.u32.totalorder %s783_s13, %s779_s23  ;;  %p787_p12 = scmp.lt.u32.totalorder %s779_s23, %s986_s18 }
 0x1d9   : > { %p781_p7 = pnand %p780_p4, %p911_p5 }
 0x1da   : > { %p786_p11 = por %p785_p10, %p784_p9 }
 0x1db   : > { %p782_p8 = pneg %p781_p7 }
 0x1dc   : > { %p788_p13 = por %p787_p12, %p786_p11 }
 0x1de   : > { %p789_p0 = pnand %p788_p13, %p782_p8 }
 0x1e0   : > { %792 = shalt.err (!%p789_p0)
}
 0x1e1   : > { %723 = dma.vmem_to_hbm [thread:$0]  (%p911_p5), %s988_s9, 128, %s986_s18, %s548_s19  }
 0x1e2 PF: > { %p729_p1 = scmp.ge.s32.totalorder %s827_s27, 2  ;;  %s573_s16 = sand.u32 1, %s815_s24  }
 0x1e3   : > { %s574_s17 = scalar_lea.sflag [#allocation3], %s573_s16 }
 0x1e4   : > { %p726_p2 = pnand %p729_p1, %p915_p6 }
 0x1e6   : > { %810 = dma.done.wait (!%p726_p2), %s574_s17, 128  }
 0x1e7   : > { %812 = vsyncadd (!%p726_p2), %s574_s17, 4294967168  ;;  %p17_p3 = scmp.ge.s32.totalorder %s898_s30, 4   ;;  %s1039_s24 = smov %s819_s25 }
 0x1e8   : > { %s1040_s25 = smov %s823_s26  ;;  %s1041_s26 = smov %s909_s10 }
 0x1e9   : > { %s1042_s27 = smov %s898_s30  ;;  %19 = sbr.rel (!%p17_p3) target bundleno = 3 (0x3), region = 86 }
 0x1f0   :  { %579 = vsyncpa [#allocation3], 1 }
 0x1f1   :  { %581 = vsyncpa [#allocation3 + $0x1], 1 }

</bundles_post_ra>
